<compile_context>
chip_gen: v7x
topology: tpu7x:2x2x1
jax: 0.10.0
libtpu: 0.0.40
codegen_flags: <defaults>
</compile_context>

<pallas_src>
import functools

import jax
import jax.numpy as jnp
from jax.experimental import pallas as pl
from jax.experimental.pallas import tpu as pltpu


def _dice_sums_kernel(x_ref, t_ref, out_ref, *, dd, tile, cps, any_mask):
    """Accumulate per-sample [sum(p*t), sum(p), sum(t)] over lane chunks.

    out_ref is a (1, 1, 3, 8, 128) block whose index is constant along the
    innermost (chunk) grid axis, so it stays VMEM-resident and acts as an
    accumulator.  Scalar partial sums are broadcast-accumulated into full
    (8, 128) vregs (unmasked lane-dense stores); the glue reads [..., 0, 0].

    NOTE: this accumulator pattern is only correct while the chunk axis stays
    the innermost grid axis and is marked "arbitrary".
    """
    s = pl.program_id(1)            # reduction-split index (per-core accumulator)
    j = pl.program_id(2)            # lane-chunk index within the split (innermost)

    @pl.when(j == 0)
    def _init():
        out_ref[...] = jnp.zeros_like(out_ref)

    chunk_start = (s * cps + j) * tile      # global lane offset of this chunk

    def _accumulate(masked):
        x = x_ref[...].astype(jnp.float32)          # (1, S, tile)
        t = t_ref[...].astype(jnp.float32)
        if masked:
            lane = jax.lax.broadcasted_iota(jnp.int32, x.shape, dimension=2)
            valid = (chunk_start + lane) < dd
            # Mask logits before the transcendental (garbage lanes never reach
            # it), then mask p again so sigmoid(0)=0.5 cannot leak into sum(p).
            x = jnp.where(valid, x, 0.0)
            t = jnp.where(valid, t, 0.0)
        # sigmoid via tanh: one EUP op + mul/add on the VPU, no f32 divide.
        p = 0.5 * jnp.tanh(0.5 * x) + 0.5
        if masked:
            p = jnp.where(valid, p, 0.0)
        out_ref[0, 0, 0] += jnp.sum(p * t)          # intersection
        out_ref[0, 0, 1] += jnp.sum(p)              # sum of probs
        out_ref[0, 0, 2] += jnp.sum(t)              # sum of targets

    if any_mask:
        # Static info says some chunk extends past dd; at runtime only those
        # chunks pay for the iota/compare/where work.
        is_partial = chunk_start + tile > dd

        @pl.when(is_partial)
        def _masked():
            _accumulate(True)

        @pl.when(jnp.logical_not(is_partial))
        def _clean():
            _accumulate(False)
    else:
        _accumulate(False)


def _round_up(v, m):
    return ((v + m - 1) // m) * m


@functools.partial(jax.jit, static_argnames=("tile_lanes",))
def soft_dice_loss(logits, targets, tile_lanes=None):
    """Matches PyTorch SoftDiceLoss.forward exactly (smooth = 1)."""
    num = logits.shape[0]
    d = 1
    for sdim in logits.shape[1:]:
        d *= sdim

    # Sublane-dense per-sample view (num, S, d/S); the reshape of a contiguous
    # row-major array is free in XLA.
    # TODO(synk): producers should keep d a multiple of 8; otherwise S degrades
    # to 4/2/1 and each vreg carries only S/8 of its payload (extra VALU work).
    S = 8
    while S > 1 and d % S != 0:
        S //= 2
    dd = d // S

    x = logits.reshape(num, S, dd)
    t = targets.reshape(num, S, dd)

    # ---- generation-aware tile / VMEM sizing --------------------------------
    try:
        vmem_cap = int(pltpu.get_tpu_info().vmem_capacity_bytes)
    except Exception:  # pragma: no cover - fall back to v7x-conservative sizing
        vmem_cap = 64 * 1024 * 1024
    if tile_lanes is None:
        # ~8 MiB f32 / input block on 128 MiB-VMEM chips (v5e/v6e),
        # ~4 MiB on 64 MiB-VMEM chips (v7x).
        tile_lanes = 262144 if vmem_cap >= (96 << 20) else 131072
    tile_lanes = max(128, (int(tile_lanes) // 128) * 128)

    # Lane tile: the full lane extent (no masking), or a 128-multiple tile with
    # last / overflow chunks masked in-kernel (never a wrapper-side jnp.pad).
    tile = dd if dd <= tile_lanes else tile_lanes
    if num == 1:
        # Single sample: split the reduction so both TensorCores (v7x) get work.
        tile = min(tile, max(128, _round_up(-(-dd // 2), 128)))
    chunks = -(-dd // tile)
    nsplit = 2 if (num == 1 and chunks >= 2) else 1
    cps = -(-chunks // nsplit)                    # chunks per split
    any_mask = (nsplit * cps * tile) > dd         # partial or overflow chunks exist

    x_b = jnp.dtype(x.dtype).itemsize
    t_b = jnp.dtype(t.dtype).itemsize
    in_block_bytes = S * tile * (x_b + t_b)
    # double-buffered inputs + double-buffered (tiny) output block + slack.
    footprint = 2 * in_block_bytes + 2 * (3 * 8 * 128 * 4) + (4 << 20)
    vmem_limit = int(min(max(footprint, 32 << 20),
                         max(vmem_cap - (16 << 20), 32 << 20)))

    kernel = functools.partial(_dice_sums_kernel,
                               dd=dd, tile=tile, cps=cps, any_mask=any_mask)

    if nsplit * cps == chunks:
        in_idx = lambda n, s, j: (n, 0, s * cps + j)
    else:
        # Overflow grid steps re-read (and fully mask) the last real chunk.
        in_idx = lambda n, s, j: (n, 0, jnp.minimum(s * cps + j, chunks - 1))
    in_spec = pl.BlockSpec((1, S, tile), in_idx)
    out_spec = pl.BlockSpec((1, 1, 3, 8, 128), lambda n, s, j: (n, s, 0, 0, 0))

    sums = pl.pallas_call(
        kernel,
        out_shape=jax.ShapeDtypeStruct((num, nsplit, 3, 8, 128), jnp.float32),
        grid_spec=pltpu.PrefetchScalarGridSpec(
            num_scalar_prefetch=0,
            grid=(num, nsplit, cps),              # reduction axis last
            in_specs=[in_spec, in_spec],
            out_specs=out_spec,
        ),
        compiler_params=pltpu.CompilerParams(
            # sample / split axes parallel (megacore), chunk axis arbitrary
            # (output block is revisited and accumulated across it).
            dimension_semantics=("parallel", "parallel", "arbitrary"),
            vmem_limit_bytes=vmem_limit,
        ),
    )(x, t)

    per = jnp.sum(sums[:, :, :, 0, 0], axis=1)     # (num, 3): [inter, sum_p, sum_t]
    inter, sp, st = per[:, 0], per[:, 1], per[:, 2]

    smooth = 1.0
    score = 2.0 * (inter + smooth) / (sp + st + smooth)
    return (1.0 - jnp.sum(score) / num).astype(jnp.float32)


def _reference(logits, targets):
    num = logits.shape[0]
    smooth = 1.0
    probs = jax.nn.sigmoid(logits)
    m1 = probs.reshape(num, -1)
    m2 = targets.reshape(num, -1).astype(probs.dtype)
    inter = (m1 * m2).sum(1)
    score = 2.0 * (inter + smooth) / (m1.sum(1) + m2.sum(1) + smooth)
    return 1.0 - score.sum() / num


if __name__ == "__main__":
    key = jax.random.PRNGKey(0)
    k1, k2, k3, k4, k5, k6 = jax.random.split(key, 6)

    # Case 1: N=2, C=4, H=W=16 -> d=1024, S=8, dd=128: single unmasked chunk.
    logits = jax.random.normal(k1, (2, 4, 16, 16), dtype=jnp.float32)
    targets = (jax.random.uniform(k2, (2, 4, 16, 16)) > 0.5).astype(jnp.float32)
    loss = jax.block_until_ready(soft_dice_loss(logits, targets))
    ref = _reference(logits, targets)
    assert jnp.allclose(loss, ref, atol=1e-5, rtol=1e-5), (loss, ref)

    # Case 2: d=1200 -> dd=150, tile=128 -> 2 chunks with a masked last chunk
    # (mask path only taken on the final chunk).
    logits2 = jax.random.normal(k3, (2, 3, 20, 20), dtype=jnp.float32)
    targets2 = (jax.random.uniform(k4, (2, 3, 20, 20)) > 0.5).astype(jnp.float32)
    loss2 = jax.block_until_ready(soft_dice_loss(logits2, targets2, tile_lanes=128))
    ref2 = _reference(logits2, targets2)
    assert jnp.allclose(loss2, ref2, atol=1e-5, rtol=1e-5), (loss2, ref2)

    # Case 3: num=1 -> reduction split across two parallel accumulators
    # (3 real chunks + 1 fully-masked overflow chunk); bf16 targets exercise
    # the dtype-agnostic reduced-HBM path.
    logits3 = jax.random.normal(k5, (1, 4, 24, 24), dtype=jnp.float32)
    targets3 = (jax.random.uniform(k6, (1, 4, 24, 24)) > 0.5).astype(jnp.bfloat16)
    loss3 = jax.block_until_ready(soft_dice_loss(logits3, targets3, tile_lanes=128))
    ref3 = _reference(logits3, targets3.astype(jnp.float32))
    assert jnp.allclose(loss3, ref3, atol=1e-5, rtol=1e-5), (loss3, ref3)

    print("KERNEL_OK")
</pallas_src>

<mosaic_0001>
module attributes {stable_mosaic.version = 11 : i64} {
  func.func @_dice_sums_kernel(%arg0: i32, %arg1: i32, %arg2: i32, %arg3: memref<1x8x128xf32, #tpu.memory_space<vmem>>, %arg4: memref<1x8x128xf32, #tpu.memory_space<vmem>>, %arg5: memref<1x1x3x8x128xf32, #tpu.memory_space<vmem>>) attributes {dimension_semantics = [#tpu.dimension_semantics<parallel>, #tpu.dimension_semantics<parallel>, #tpu.dimension_semantics<arbitrary>], iteration_bounds = array<i64: 2, 1, 1>, scalar_prefetch = 0 : i64, scratch_operands = 0 : i64, tpu.core_type = #tpu.core_type<tc>, window_params = [{transform_indices = @transform_0, window_bounds = array<i64: 1, 8, 128>}, {transform_indices = @transform_1, window_bounds = array<i64: 1, 8, 128>}, {transform_indices = @transform_2, window_bounds = array<i64: 1, 1, 3, 8, 128>}]} {
    %c0_i32 = arith.constant 0 : i32
    %0 = arith.cmpi eq, %arg2, %c0_i32 : i32
    %1 = arith.extui %0 : i1 to i32
    %c0_i32_0 = arith.constant 0 : i32
    %2 = arith.cmpi ne, %1, %c0_i32_0 : i32
    scf.if %2 {
      %cst_39 = arith.constant 0.000000e+00 : f32
      %46 = vector.broadcast %cst_39 : f32 to vector<1x1x3x8x128xf32>
      %c0_40 = arith.constant 0 : index
      %c0_41 = arith.constant 0 : index
      %c0_42 = arith.constant 0 : index
      %c0_43 = arith.constant 0 : index
      %c0_44 = arith.constant 0 : index
      %47 = vector.load %arg5[%c0_40, %c0_41, %c0_42, %c0_43, %c0_44] : memref<1x1x3x8x128xf32, #tpu.memory_space<vmem>>, vector<1x1x3x8x128xf32>
      tpu.vector_store %arg5[%c0_40, %c0_41, %c0_42, %c0_43, %c0_44], %46 {strides = array<i32>} : memref<1x1x3x8x128xf32, #tpu.memory_space<vmem>>, vector<1x1x3x8x128xf32>,
    } else {
    }
    %c0 = arith.constant 0 : index
    %c0_1 = arith.constant 0 : index
    %c0_2 = arith.constant 0 : index
    %3 = vector.load %arg3[%c0, %c0_1, %c0_2] : memref<1x8x128xf32, #tpu.memory_space<vmem>>, vector<1x8x128xf32>
    %c0_3 = arith.constant 0 : index
    %c0_4 = arith.constant 0 : index
    %c0_5 = arith.constant 0 : index
    %4 = vector.load %arg4[%c0_3, %c0_4, %c0_5] : memref<1x8x128xf32, #tpu.memory_space<vmem>>, vector<1x8x128xf32>
    %cst = arith.constant 5.000000e-01 : f32
    %5 = vector.broadcast %cst : f32 to vector<1x8x128xf32>
    %6 = arith.mulf %5, %3 : vector<1x8x128xf32>
    %7 = math.tanh %6 : vector<1x8x128xf32>
    %cst_6 = arith.constant 5.000000e-01 : f32
    %8 = vector.broadcast %cst_6 : f32 to vector<1x8x128xf32>
    %9 = arith.mulf %8, %7 : vector<1x8x128xf32>
    %cst_7 = arith.constant 5.000000e-01 : f32
    %10 = vector.broadcast %cst_7 : f32 to vector<1x8x128xf32>
    %11 = arith.addf %9, %10 : vector<1x8x128xf32>
    %c0_8 = arith.constant 0 : index
    %c0_9 = arith.constant 0 : index
    %c0_10 = arith.constant 0 : index
    %c0_11 = arith.constant 0 : index
    %c0_12 = arith.constant 0 : index
    %12 = vector.load %arg5[%c0_8, %c0_9, %c0_10, %c0_11, %c0_12] : memref<1x1x3x8x128xf32, #tpu.memory_space<vmem>>, vector<1x1x1x8x128xf32>
    %13 = vector.shape_cast %12 : vector<1x1x1x8x128xf32> to vector<8x128xf32>
    %14 = arith.mulf %11, %4 : vector<1x8x128xf32>
    %15 = vector.shape_cast %14 : vector<1x8x128xf32> to vector<1x1x8x128xf32>
    %cst_13 = arith.constant dense<0.000000e+00> : vector<1xf32>
    %16 = vector.multi_reduction <add>, %15, %cst_13 [1, 2, 3] : vector<1x1x8x128xf32> to vector<1xf32>
    %17 = vector.shape_cast %16 : vector<1xf32> to vector<1x1x1x1xf32>
    %18 = vector.extract %17[0, 0, 0, 0] : f32 from vector<1x1x1x1xf32>
    %19 = vector.broadcast %18 : f32 to vector<8x128xf32>
    %20 = arith.addf %13, %19 : vector<8x128xf32>
    %c0_14 = arith.constant 0 : index
    %c0_15 = arith.constant 0 : index
    %c0_16 = arith.constant 0 : index
    %c0_17 = arith.constant 0 : index
    %c0_18 = arith.constant 0 : index
    %21 = vector.load %arg5[%c0_14, %c0_15, %c0_16, %c0_17, %c0_18] : memref<1x1x3x8x128xf32, #tpu.memory_space<vmem>>, vector<1x1x1x8x128xf32>
    %22 = vector.shape_cast %21 : vector<1x1x1x8x128xf32> to vector<8x128xf32>
    %23 = vector.shape_cast %20 : vector<8x128xf32> to vector<1x1x1x8x128xf32>
    tpu.vector_store %arg5[%c0_14, %c0_15, %c0_16, %c0_17, %c0_18], %23 {strides = array<i32>} : memref<1x1x3x8x128xf32, #tpu.memory_space<vmem>>, vector<1x1x1x8x128xf32>,
    %c0_19 = arith.constant 0 : index
    %c0_20 = arith.constant 0 : index
    %c1 = arith.constant 1 : index
    %c0_21 = arith.constant 0 : index
    %c0_22 = arith.constant 0 : index
    %24 = vector.load %arg5[%c0_19, %c0_20, %c1, %c0_21, %c0_22] : memref<1x1x3x8x128xf32, #tpu.memory_space<vmem>>, vector<1x1x1x8x128xf32>
    %25 = vector.shape_cast %24 : vector<1x1x1x8x128xf32> to vector<8x128xf32>
    %26 = vector.shape_cast %11 : vector<1x8x128xf32> to vector<1x1x8x128xf32>
    %cst_23 = arith.constant dense<0.000000e+00> : vector<1xf32>
    %27 = vector.multi_reduction <add>, %26, %cst_23 [1, 2, 3] : vector<1x1x8x128xf32> to vector<1xf32>
    %28 = vector.shape_cast %27 : vector<1xf32> to vector<1x1x1x1xf32>
    %29 = vector.extract %28[0, 0, 0, 0] : f32 from vector<1x1x1x1xf32>
    %30 = vector.broadcast %29 : f32 to vector<8x128xf32>
    %31 = arith.addf %25, %30 : vector<8x128xf32>
    %c0_24 = arith.constant 0 : index
    %c0_25 = arith.constant 0 : index
    %c1_26 = arith.constant 1 : index
    %c0_27 = arith.constant 0 : index
    %c0_28 = arith.constant 0 : index
    %32 = vector.load %arg5[%c0_24, %c0_25, %c1_26, %c0_27, %c0_28] : memref<1x1x3x8x128xf32, #tpu.memory_space<vmem>>, vector<1x1x1x8x128xf32>
    %33 = vector.shape_cast %32 : vector<1x1x1x8x128xf32> to vector<8x128xf32>
    %34 = vector.shape_cast %31 : vector<8x128xf32> to vector<1x1x1x8x128xf32>
    tpu.vector_store %arg5[%c0_24, %c0_25, %c1_26, %c0_27, %c0_28], %34 {strides = array<i32>} : memref<1x1x3x8x128xf32, #tpu.memory_space<vmem>>, vector<1x1x1x8x128xf32>,
    %c0_29 = arith.constant 0 : index
    %c0_30 = arith.constant 0 : index
    %c2 = arith.constant 2 : index
    %c0_31 = arith.constant 0 : index
    %c0_32 = arith.constant 0 : index
    %35 = vector.load %arg5[%c0_29, %c0_30, %c2, %c0_31, %c0_32] : memref<1x1x3x8x128xf32, #tpu.memory_space<vmem>>, vector<1x1x1x8x128xf32>
    %36 = vector.shape_cast %35 : vector<1x1x1x8x128xf32> to vector<8x128xf32>
    %37 = vector.shape_cast %4 : vector<1x8x128xf32> to vector<1x1x8x128xf32>
    %cst_33 = arith.constant dense<0.000000e+00> : vector<1xf32>
    %38 = vector.multi_reduction <add>, %37, %cst_33 [1, 2, 3] : vector<1x1x8x128xf32> to vector<1xf32>
    %39 = vector.shape_cast %38 : vector<1xf32> to vector<1x1x1x1xf32>
    %40 = vector.extract %39[0, 0, 0, 0] : f32 from vector<1x1x1x1xf32>
    %41 = vector.broadcast %40 : f32 to vector<8x128xf32>
    %42 = arith.addf %36, %41 : vector<8x128xf32>
    %c0_34 = arith.constant 0 : index
    %c0_35 = arith.constant 0 : index
    %c2_36 = arith.constant 2 : index
    %c0_37 = arith.constant 0 : index
    %c0_38 = arith.constant 0 : index
    %43 = vector.load %arg5[%c0_34, %c0_35, %c2_36, %c0_37, %c0_38] : memref<1x1x3x8x128xf32, #tpu.memory_space<vmem>>, vector<1x1x1x8x128xf32>
    %44 = vector.shape_cast %43 : vector<1x1x1x8x128xf32> to vector<8x128xf32>
    %45 = vector.shape_cast %42 : vector<8x128xf32> to vector<1x1x1x8x128xf32>
    tpu.vector_store %arg5[%c0_34, %c0_35, %c2_36, %c0_37, %c0_38], %45 {strides = array<i32>} : memref<1x1x3x8x128xf32, #tpu.memory_space<vmem>>, vector<1x1x1x8x128xf32>,
    return
  }
  func.func @transform_0(%arg0: i32, %arg1: i32, %arg2: i32) -> (i32, i32, i32) {
    %c1_i32 = arith.constant 1 : i32
    %0 = arith.muli %arg1, %c1_i32 : i32
    %1 = arith.addi %0, %arg2 : i32
    %c0_i32 = arith.constant 0 : i32
    %c0_i32_0 = arith.constant 0 : i32
    return %arg0, %c0_i32, %1 : i32, i32, i32
  }
  func.func @transform_1(%arg0: i32, %arg1: i32, %arg2: i32) -> (i32, i32, i32) {
    %c1_i32 = arith.constant 1 : i32
    %0 = arith.muli %arg1, %c1_i32 : i32
    %1 = arith.addi %0, %arg2 : i32
    %c0_i32 = arith.constant 0 : i32
    %c0_i32_0 = arith.constant 0 : i32
    return %arg0, %c0_i32, %1 : i32, i32, i32
  }
  func.func @transform_2(%arg0: i32, %arg1: i32, %arg2: i32) -> (i32, i32, i32, i32, i32) {
    %c0_i32 = arith.constant 0 : i32
    %c0_i32_0 = arith.constant 0 : i32
    %c0_i32_1 = arith.constant 0 : i32
    %c0_i32_2 = arith.constant 0 : i32
    return %arg0, %arg1, %c0_i32, %c0_i32_0, %c0_i32_1 : i32, i32, i32, i32, i32
  }
}

</mosaic_0001>

<bundles_post_ra>
// kernel: soft_dice_loss.1
= control target key start
LH: loop header
LB: loop body
LE: loop exit
PB: predicated region body
PF: predicated region fallthrough
CT: control target
= control target key end

     0   :  { %s469_s9 = smov 0   ;;  %s471_s10 = smov 0   ;;  %s509_s0 = inlined_call_operand.vmem [shape: f32[2,8,128], index: 0, kind: input, shape index: {}]   ;;  %s510_s1 = inlined_call_operand.vmem [shape: f32[2,8,128], index: 1, kind: input, shape index: {}]   ;;  %s511_s2 = inlined_call_operand.vmem [shape: f32[2,1,3,8,128], index: 2, kind: output, shape index: {}]  }
   0x1   :  { %s473_s11 = smov 0  }
   0x2 LB: > { %s31_s12 = sadd.s32 1, %s448_s10  ;;  %p386_p0 = scmp.ge.s32.totalorder %s452_s11, 1  ;;  %s452_s11 = sphi %s473_s11, %s12_s11   ;;  %s448_s10 = sphi %s471_s10, %s513_s10   ;;  %s444_s9 = sphi %s469_s9, %s512_s9  }
   0x3   : > { %p33_p1 = scmp.ge.s32.totalorder %s31_s12, 2  ;;  %p159_p2 = scmp.lt.s32.totalorder %s452_s11, 3 }
   0x5   : > { %s515_s12 = smov (%p33_p1, %s31_s12), 0  ;;  %p160_p3 = pnand %p386_p0, %p159_p2 }
   0x6   : > { %p197_p4 = scmp.lt.s32.totalorder (!%p160_p3), %s444_s9, 1 }
   0x7   : > { %163 = sbr.rel (%p160_p3) target bundleno = 249 (0xf9), region = 28 }
   0xe   : > { %s517_s9 = smov (!%p197_p4, %s444_s9), 1 }
   0xf   : > { %s387_s13 = sshll.u32 %s517_s9, 3  ;;  %s396_s20 = smul.u32 24, %s517_s9 }
  0x10   : > { %s212_s16 = scalar_lea.vmem %s510_s1, %s387_s13  ;;  %s203_s19 = scalar_lea.vmem %s509_s0, %s387_s13 }
  0x11   : > { %v231_v0 = vld [vmem:[%s212_s16] sm:$0xff]  ;;  %s222_s24 = scalar_lea.vmem %s511_s2, %s396_s20 }
  0x12   : > { %v230_v1 = vld [vmem:[%s203_s19] sm:$0xff]  ;;  %266 = vadd.xlane.f32.xlu1 %v231_v0 }
  0x13   : > { %v232_v2 = vmul.f32 0.5, %v230_v1 }
  0x15   : > { %428 = vtanh.f32 %v232_v2 }
  0x1f   : > { %v429_v3 = vpop.eup %428 }
  0x20   : > { %v234_v4 = vmul.f32 0.5, %v429_v3 }
  0x22   : > { %v235_v5 = vadd.f32 0.5, %v234_v4 }
  0x24   : > { %v237_v6 = vmul.f32 %v235_v5, %v231_v0 }
  0x26   : > { %238 = vadd.xlane.f32.xlu0 %v237_v6 }
  0x2a   : > { %252 = vadd.xlane.f32.xlu0 %v235_v5 }
  0x9f   : > { %v267_v7 = vpop.xlane.xlu1 %266 }
  0xa0   : > { %v268_v8 = vrot.slane %v267_v7, 4 }
  0xa2   : > { %v269_v9 = vadd.f32 %v268_v8, %v267_v7 }
  0xa4   : > { %v270_v13 = vrot.slane %v269_v9, 2 }
  0xa6   : > { %v271_v19 = vadd.f32 %v270_v13, %v269_v9 }
  0xa8   : > { %v272_v24 = vrot.slane %v271_v19, 1 }
  0xaa   : > { %v273_v27 = vadd.f32 %v272_v24, %v271_v19 }
  0xb3   : > { %v239_v10 = vpop.xlane.xlu0 %238 }
  0xb4   : > { %v240_v11 = vrot.slane %v239_v10, 4 }
  0xb6   : > { %v241_v12 = vadd.f32 %v240_v11, %v239_v10 }
  0xb7   : > { %v253_v14 = vpop.xlane.xlu0 %252 }
  0xb8   : > { %v242_v15 = vrot.slane %v241_v12, 2  ;;  %v254_v16 = vrot.slane %v253_v14, 4 }
  0xba   : > { %v255_v17 = vadd.f32 %v254_v16, %v253_v14  ;;  %v243_v18 = vadd.f32 %v242_v15, %v241_v12 }
  0xbc   : > { %v256_v20 = vrot.slane %v255_v17, 2  ;;  %v244_v21 = vrot.slane %v243_v18, 1 }
  0xbe   : > { %v257_v22 = vadd.f32 %v256_v20, %v255_v17  ;;  %v245_v23 = vadd.f32 %v244_v21, %v243_v18 }
  0xc0   : > { %397 = vpush %v245_v23  ;;  %v258_v25 = vrot.slane %v257_v22, 1 }
  0xc2   : > { %v259_v26 = vadd.f32 %v258_v25, %v257_v22 }
  0xc4   : > { %399 = vpush %v259_v26 }
  0xc5   : > { %401 = vpush %v273_v27 }
  0xf1   : > { %s398_s21 = spop %397 }
  0xf2   : > { %v247_v28 = vstv %s398_s21 }
  0xf3   : > { %249 = vst [vmem:[%s222_s24] sm:$0xff] %v247_v28 }
  0xf5   : > { %s400_s25 = spop %399 }
  0xf6   : > { %v261_v29 = vstv %s400_s25  ;;  %s402_s26 = spop %401 }
  0xf7   : > { %v275_v30 = vstv %s402_s26  ;;  %391 = vst [vmem:[%s222_s24 + $0x8] sm:$0xff] %v261_v29 }
  0xf8   : > { %393 = vst [vmem:[%s222_s24 + $0x10] sm:$0xff] %v275_v30 }
  0xf9 PF: > { %s12_s11 = sadd.s32 1, %s452_s11   ;;  %s512_s9 = smov %s448_s10 }
  0xfa   : > { %p9_p5 = scmp.ge.s32.totalorder %s12_s11, 4   ;;  %s513_s10 = smov %s515_s12 }
  0xfc   :  { %11 = sbr.rel (!%p9_p5) target bundleno = 2 (0x2), region = 67 }

</bundles_post_ra>
